<compile_context>
chip_gen: v5e
topology: v5e:2x2
jax: 0.10.0
libtpu: 0.0.40
codegen_flags: <defaults>
</compile_context>

<pallas_src>
import functools

import jax
import jax.numpy as jnp
from jax.experimental import pallas as pl
from jax.experimental.pallas import tpu as pltpu


def _clamp_kernel(x_ref, o_ref, *, min_val, max_val):
    # Cast the bounds to the tensor dtype so integer/bf16 inputs keep their
    # dtype (no float promotion), then clamp on the VPU.
    lo = jnp.asarray(min_val, dtype=x_ref.dtype)
    hi = jnp.asarray(max_val, dtype=x_ref.dtype)
    o_ref[...] = jnp.clip(x_ref[...], lo, hi)


def _pick_lane(n, sublane):
    """Widest lane dim (multiple of 128) that divides n, preferring rows>=sublane."""
    best = None
    for lane in (4096, 2048, 1024, 512, 256, 128):
        if n % lane == 0:
            if (n // lane) >= sublane:
                return lane
            if best is None:
                best = lane
    return best  # None => n is not a multiple of 128 (rare path, needs padding)


def clamp_pallas(x, min_val=0.0, max_val=1.0, *, block_bytes=2 << 20,
                 donate_input=False):
    """torch.clamp(x, min, max) equivalent via a Pallas TPU kernel.

    block_bytes ~2 MiB keeps double-buffered in+out (~4x block) well inside
    the default scoped-VMEM limit on every generation (v5e 16 MiB, v6e 32 MiB,
    v7x 32/64 MiB) while sitting on the flat part of the HBM-roofline curve.
    """
    orig_shape = x.shape
    dtype = x.dtype
    n = x.size
    if n == 0:
        return x

    itemsize = jnp.dtype(dtype).itemsize
    sublane = max(8, 32 // itemsize)          # 8 f32, 16 bf16, 32 int8/fp8

    lane = _pick_lane(n, sublane)
    if lane is None:
        # Ragged tail: pad the flat array only up to the next 128 boundary
        # (< 128 extra elements), never up to a full tile.
        lane = 128
        rows = pl.cdiv(n, lane)
        x_flat = jnp.pad(x.reshape(-1), (0, rows * lane - n))
        padded = True
    else:
        rows = n // lane
        x_flat = x.reshape(-1)                # metadata-only reshape, no HBM copy
        padded = False
    x2d = x_flat.reshape(rows, lane)

    # ~block_bytes per block, rounded down to the dtype's sublane multiple,
    # capped at the full row count (full-dim blocks are always legal).
    target_rows = max(1, block_bytes // (lane * itemsize))
    tile_rows = max(sublane, (target_rows // sublane) * sublane)
    tile_rows = min(tile_rows, rows)

    grid = (pl.cdiv(rows, tile_rows),)

    kernel = functools.partial(_clamp_kernel, min_val=min_val, max_val=max_val)
    call_kwargs = {}
    if donate_input:
        # Only beneficial if the caller donates x at the jit boundary;
        # otherwise XLA would insert a defensive copy, so it is opt-in.
        call_kwargs["input_output_aliases"] = {0: 0}

    out2d = pl.pallas_call(
        kernel,
        out_shape=jax.ShapeDtypeStruct((rows, lane), dtype),
        grid=grid,
        in_specs=[pl.BlockSpec((tile_rows, lane), lambda i: (i, 0))],
        out_specs=pl.BlockSpec((tile_rows, lane), lambda i: (i, 0)),
        compiler_params=pltpu.CompilerParams(
            dimension_semantics=("parallel",),   # lets v7x shard across its 2 TCs
        ),
        **call_kwargs,
    )(x2d)

    if padded:
        return out2d.reshape(-1)[:n].reshape(orig_shape)
    return out2d.reshape(orig_shape)


class ClampPallas:
    """Mirror of the PyTorch Clamp module (min=0, max=1 by default)."""

    def __init__(self, min=0, max=1):
        self.min, self.max = min, max

    def __call__(self, x):
        return clamp_pallas(x, self.min, self.max)


if __name__ == "__main__":
    key = jax.random.PRNGKey(0)
    # NCHW input, small shape; values outside [0, 1] to exercise both bounds.
    x = jax.random.normal(key, (2, 4, 16, 16), dtype=jnp.float32) * 2.0

    clamp = ClampPallas(min=0, max=1)
    out = jax.block_until_ready(clamp(x))

    ref = jnp.clip(x, 0.0, 1.0)
    assert out.shape == x.shape and out.dtype == x.dtype
    assert jnp.allclose(out, ref), "mismatch vs reference clamp (f32 aligned)"

    # Extra robustness check: ragged, non-128-aligned bf16 input (padding path).
    x2 = (jax.random.normal(key, (3, 5, 7), dtype=jnp.float32) * 2.0).astype(jnp.bfloat16)
    out2 = jax.block_until_ready(clamp_pallas(x2, 0.0, 1.0))
    ref2 = jnp.clip(x2, jnp.bfloat16(0.0), jnp.bfloat16(1.0))
    assert out2.shape == x2.shape and out2.dtype == x2.dtype
    assert jnp.array_equal(out2, ref2), "mismatch vs reference clamp (bf16 ragged)"

    print("KERNEL_OK")
</pallas_src>

<mosaic_0001>
module attributes {stable_mosaic.version = 11 : i64} {
  func.func @_clamp_kernel(%arg0: i32, %arg1: memref<8x256xf32, #tpu.memory_space<vmem>>, %arg2: memref<8x256xf32, #tpu.memory_space<vmem>>) attributes {dimension_semantics = [#tpu.dimension_semantics<parallel>], iteration_bounds = array<i64: 1>, scalar_prefetch = 0 : i64, scratch_operands = 0 : i64, tpu.core_type = #tpu.core_type<tc>, window_params = [{transform_indices = @transform_0, window_bounds = array<i64: 8, 256>}, {transform_indices = @transform_1, window_bounds = array<i64: 8, 256>}]} {
    %c0 = arith.constant 0 : index
    %c0_0 = arith.constant 0 : index
    %0 = vector.load %arg1[%c0, %c0_0] : memref<8x256xf32, #tpu.memory_space<vmem>>, vector<8x256xf32>
    %cst = arith.constant 0.000000e+00 : f32
    %cst_1 = arith.constant 1.000000e+00 : f32
    %1 = vector.broadcast %cst : f32 to vector<8x256xf32>
    %2 = arith.maximumf %1, %0 : vector<8x256xf32>
    %3 = vector.broadcast %cst_1 : f32 to vector<8x256xf32>
    %4 = arith.minimumf %3, %2 : vector<8x256xf32>
    %c0_2 = arith.constant 0 : index
    %c0_3 = arith.constant 0 : index
    %5 = vector.load %arg2[%c0_2, %c0_3] : memref<8x256xf32, #tpu.memory_space<vmem>>, vector<8x256xf32>
    tpu.vector_store %arg2[%c0_2, %c0_3], %4 {strides = array<i32>} : memref<8x256xf32, #tpu.memory_space<vmem>>, vector<8x256xf32>,
    return
  }
  func.func @transform_0(%arg0: i32) -> (i32, i32) {
    %c0_i32 = arith.constant 0 : i32
    %c0_i32_0 = arith.constant 0 : i32
    return %arg0, %c0_i32 : i32, i32
  }
  func.func @transform_1(%arg0: i32) -> (i32, i32) {
    %c0_i32 = arith.constant 0 : i32
    %c0_i32_0 = arith.constant 0 : i32
    return %arg0, %c0_i32 : i32, i32
  }
}

</mosaic_0001>

<bundles_post_ra>
// kernel: tpu_custom_call.1
= control target key start
LH: loop header
LB: loop body
LE: loop exit
PB: predicated region body
PF: predicated region fallthrough
CT: control target
= control target key end

     0   :  { %6 = vsyncpa [#allocation3], 0  ;;  %s120_s0 = inlined_call_operand.hbm [shape: f32[8,256], index: 0, kind: input, shape index: {}]   ;;  %s121_s1 = inlined_call_operand.hbm [shape: f32[8,256], index: 1, kind: output, shape index: {}]  }
   0x1   :  { %7 = vsyncpa [#allocation4], 0  ;;  %s13_s8 = sshll.u32 %s120_s0, 4  ;;  %s102_s9 = smov [#allocation2]   ;;  %s14_s8 = int_to_ptr.hbm [resolvable:$true] %s13_s8 }
   0x2   :  { %s15_s10 = sshll.u32 %s102_s9, 4  ;;  %s16_s10 = int_to_ptr.vmem [resolvable:$true] %s15_s10 }
   0x3   :  { %18 = dma.hbm_to_vmem [thread:$0]  %s14_s8, 256, %s16_s10, [#allocation3]  }
   0x4   :  { %98 = dma.done.wait [#allocation3], 256  }
   0x5   :  { %99 = vsyncadd [#allocation3], 4294967040  ;;  %v23_v0 = vld [vmem:[#allocation2] sm:$0xff]  ;;  %v24_v1 = vld [vmem:[#allocation2 + $0x8] sm:$0xff]  ;;  %s103_s11 = smov [#allocation5]   ;;  %s38_s15 = sshll.u32 %s121_s1, 4  ;;  %s39_s15 = int_to_ptr.hbm [resolvable:$true] %s38_s15 }
   0x6   :  { %v25_v2 = vmax.f32 %v23_v0, 0.0  ;;  %v26_v3 = vmax.f32 %v24_v1, 0.0  ;;  %s36_s12 = sshll.u32 %s103_s11, 4  ;;  %s37_s12 = int_to_ptr.vmem [resolvable:$true] %s36_s12 }
   0x8   :  { %v27_v4 = vmin.f32 %v25_v2, 1.0  ;;  %v28_v5 = vmin.f32 %v26_v3, 1.0 }
   0xa   :  { %29 = vst [vmem:[#allocation5] sm:$0xff] %v27_v4 }
   0xb   :  { %30 = vst [vmem:[#allocation5 + $0x8] sm:$0xff] %v28_v5 }
   0xc   :  { %41 = dma.vmem_to_hbm [thread:$0]  %s37_s12, 256, %s39_s15, [#allocation4]  }
   0xd   :  { %100 = dma.done.wait [#allocation4], 256  }
   0xe   :  { %101 = vsyncadd [#allocation4], 4294967040 }
   0xf   :  { %46 = vsyncpa [#allocation3], 1 }
  0x10   :  { %47 = vsyncpa [#allocation4], 1 }

</bundles_post_ra>
